<compile_context>
chip_gen: v6e
topology: v6e:2x2x1
jax: 0.10.0
libtpu: 0.0.40
codegen_flags: <defaults>
</compile_context>

<pallas_src>
import jax
import jax.numpy as jnp
from jax.experimental import pallas as pl
from jax.experimental.pallas import tpu as pltpu


def _edgeconv_kernel(blk_ref,                                   # SMEM: (G,) node-block id per edge tile
                     rows_ref, xn_ref, xblk_ref, inv_ref,
                     w1c_ref, w1n_ref, b1_ref, w2_ref, b2_ref,
                     out_ref):
    i = pl.program_id(0)
    num_tiles = pl.num_programs(0)
    cur = blk_ref[i]
    prev = blk_ref[jnp.maximum(i - 1, 0)]
    nxt = blk_ref[jnp.minimum(i + 1, num_tiles - 1)]
    first_of_block = jnp.logical_or(i == 0, cur != prev)
    last_of_block = jnp.logical_or(i == num_tiles - 1, cur != nxt)

    @pl.when(first_of_block)
    def _():
        out_ref[...] = jnp.zeros_like(out_ref)

    cd = w1c_ref.dtype                          # MXU compute dtype (f32 or bf16), f32 accumulation
    tile_n = out_ref.shape[0]
    tile_e = rows_ref.shape[-1]

    rows = rows_ref[0]                          # (1, TE) int32 local row ids; -1 marks padding
    node_iota = jax.lax.broadcasted_iota(jnp.int32, (tile_n, tile_e), 0)
    onehot_t = (rows == node_iota).astype(cd)   # (TN, TE); padded edges -> all-zero column

    # gather x[row] for this tile from the resident node block (contract axis 0 -> no transpose)
    xc = jax.lax.dot_general(onehot_t, xblk_ref[...],
                             dimension_numbers=(((0,), (0,)), ((), ())),
                             preferred_element_type=jnp.float32)         # (TE, F)

    # MLP: concat([xc, xn - xc]) @ W1 == xc @ (W1a - W1b) + xn @ W1b
    h = (jnp.dot(xc.astype(cd), w1c_ref[...], preferred_element_type=jnp.float32)
         + jnp.dot(xn_ref[...], w1n_ref[...], preferred_element_type=jnp.float32)
         + b1_ref[...])
    h = jnp.maximum(h, 0.0)
    h = jnp.dot(h.astype(cd), w2_ref[...], preferred_element_type=jnp.float32) + b2_ref[...]
    h = jnp.maximum(h, 0.0)                                              # (TE, H) f32

    # segment scatter-add into the resident (TN, H) output block (index_add_ equivalent)
    out_ref[...] += jnp.dot(onehot_t, h.astype(cd), preferred_element_type=jnp.float32)

    @pl.when(last_of_block)
    def _():
        out_ref[...] = out_ref[...] * inv_ref[...]      # mean: divide by clamp(count, 1)


def custom_static_edge_conv(x, edge_index, w1, b1, w2, b2, *,
                            tile_e=512, tile_n=128, compute_dtype=jnp.float32):
    """x: (N, F) f32, edge_index: (2, E) int32, w1: (2F, H), w2: (H, H). Returns (N, H) f32."""
    n, f = x.shape
    e = edge_index.shape[1]
    h_dim = w2.shape[1]
    assert tile_e % 8 == 0 and tile_n % 8 == 0

    nb = pl.cdiv(n, tile_n)              # number of node blocks
    n_pad = nb * tile_n
    g = pl.cdiv(e, tile_e) + nb          # static upper bound on edge tiles (>= 1 tile / block)
    e_pad = g * tile_e

    row = edge_index[0].astype(jnp.int32)
    col = edge_index[1].astype(jnp.int32)

    # ---- static-shape preprocessing (plain JAX glue; the graph is static) ----
    order = jnp.argsort(row)
    row_s = row[order]
    col_s = col[order]
    blk_of_edge = row_s // tile_n                                        # non-decreasing
    blk_counts = jnp.bincount(blk_of_edge, length=nb)
    tiles_per_blk = jnp.maximum((blk_counts + tile_e - 1) // tile_e, 1)
    tile_end = jnp.cumsum(tiles_per_blk)
    tile_start = tile_end - tiles_per_blk
    # node-block id of every edge tile; trailing dummy tiles stick to the last block so
    # block ids stay non-decreasing (output block visited in one contiguous run).
    blk_ids = jnp.minimum(
        jnp.searchsorted(tile_end, jnp.arange(g), side="right"), nb - 1).astype(jnp.int32)

    edge_start = jnp.cumsum(blk_counts) - blk_counts
    pos = tile_start[blk_of_edge] * tile_e + (jnp.arange(e) - edge_start[blk_of_edge])
    local_rows = (jnp.full((e_pad,), -1, jnp.int32)
                  .at[pos].set(row_s - blk_of_edge * tile_n)
                  .reshape(g, 1, tile_e))                                # -1 => padded edge
    col_padded = jnp.zeros((e_pad,), jnp.int32).at[pos].set(col_s)

    x_pad = jnp.zeros((n_pad, f), jnp.float32).at[:n, :].set(x.astype(jnp.float32))
    xn = x_pad[col_padded].astype(compute_dtype)                         # (E_pad, F)
    # TODO(synk): the x[col] gather is a data-dependent global gather; it stays in XLA
    # (could become an in-kernel DMA gather) rather than a Pallas BlockSpec.

    inv_counts = (1.0 / jnp.maximum(jnp.bincount(row, length=n_pad), 1)
                  ).astype(jnp.float32).reshape(n_pad, 1)

    w1c = (w1[:f] - w1[f:]).astype(compute_dtype)        # acts on x_center
    w1n = w1[f:].astype(compute_dtype)                   # acts on x_neighbor
    w2c = w2.astype(compute_dtype)
    b1_2d = b1.reshape(1, h_dim).astype(jnp.float32)
    b2_2d = b2.reshape(1, h_dim).astype(jnp.float32)
    x_in = x_pad.astype(compute_dtype)

    grid_spec = pltpu.PrefetchScalarGridSpec(
        num_scalar_prefetch=1,
        grid=(g,),
        in_specs=[
            pl.BlockSpec((1, 1, tile_e), lambda i, blk: (i, 0, 0)),      # local row ids (lane-dense)
            pl.BlockSpec((tile_e, f), lambda i, blk: (i, 0)),            # neighbor features x[col]
            pl.BlockSpec((tile_n, f), lambda i, blk: (blk[i], 0)),       # node block of x (for x[row])
            pl.BlockSpec((tile_n, 1), lambda i, blk: (blk[i], 0)),       # 1 / clamp(count, 1)
            pl.BlockSpec((f, h_dim), lambda i, blk: (0, 0)),             # W1a - W1b
            pl.BlockSpec((f, h_dim), lambda i, blk: (0, 0)),             # W1b
            pl.BlockSpec((1, h_dim), lambda i, blk: (0, 0)),             # b1
            pl.BlockSpec((h_dim, h_dim), lambda i, blk: (0, 0)),         # W2
            pl.BlockSpec((1, h_dim), lambda i, blk: (0, 0)),             # b2
        ],
        out_specs=pl.BlockSpec((tile_n, h_dim), lambda i, blk: (blk[i], 0)),
    )

    out = pl.pallas_call(
        _edgeconv_kernel,
        out_shape=jax.ShapeDtypeStruct((n_pad, h_dim), jnp.float32),
        grid_spec=grid_spec,
        # Edge-tile axis carries a data-dependent reduction into the output -> "arbitrary".
        # TODO(synk): a v7x megacore split (leading core-parallel axis with per-core
        # partial blocks + combine) is not implemented here.
        compiler_params=pltpu.CompilerParams(dimension_semantics=("arbitrary",)),
    )(blk_ids, local_rows, xn, x_in, inv_counts, w1c, w1n, b1_2d, w2c, b2_2d)
    return out[:n]


def _reference(x, edge_index, w1, b1, w2, b2):
    row, col = edge_index[0], edge_index[1]
    xc, xn = x[row], x[col]
    ef = jnp.concatenate([xc, xn - xc], axis=-1)
    h = jnp.maximum(ef @ w1 + b1, 0.0)
    h = jnp.maximum(h @ w2 + b2, 0.0)
    n = x.shape[0]
    acc = jnp.zeros((n, h.shape[-1]), jnp.float32).at[row].add(h)
    counts = jnp.maximum(jnp.bincount(row, length=n), 1).astype(jnp.float32)
    return acc / counts[:, None]


if __name__ == "__main__":
    key = jax.random.PRNGKey(0)
    k_x, k_r, k_c, k_w1, k_b1, k_w2, k_b2 = jax.random.split(key, 7)

    N, F, H, E = 192, 16, 32, 1000   # small deterministic shapes (E not a tile multiple on purpose)

    x = jax.random.normal(k_x, (N, F), dtype=jnp.float32)
    row = jax.random.randint(k_r, (E,), 0, N, dtype=jnp.int32)
    col = jax.random.randint(k_c, (E,), 0, N, dtype=jnp.int32)
    edge_index = jnp.stack([row, col], axis=0)

    # nn_module ~ Sequential(Linear(2F, H), ReLU, Linear(H, H), ReLU), deterministic init
    w1 = jax.random.normal(k_w1, (2 * F, H), dtype=jnp.float32) * 0.1
    b1 = jax.random.normal(k_b1, (H,), dtype=jnp.float32) * 0.01
    w2 = jax.random.normal(k_w2, (H, H), dtype=jnp.float32) * 0.1
    b2 = jax.random.normal(k_b2, (H,), dtype=jnp.float32) * 0.01

    ref = _reference(x, edge_index, w1, b1, w2, b2)

    out = custom_static_edge_conv(x, edge_index, w1, b1, w2, b2,
                                  tile_e=128, tile_n=64)
    out = jax.block_until_ready(out)
    assert out.shape == ref.shape
    assert jnp.allclose(out, ref, atol=5e-3, rtol=5e-3), "f32 mismatch vs reference"

    # bf16 MXU operands with f32 accumulation (perf-review item); looser tolerance.
    out_bf16 = custom_static_edge_conv(x, edge_index, w1, b1, w2, b2,
                                       tile_e=128, tile_n=64,
                                       compute_dtype=jnp.bfloat16)
    out_bf16 = jax.block_until_ready(out_bf16)
    assert jnp.allclose(out_bf16, ref, atol=5e-2, rtol=5e-2), "bf16 mismatch vs reference"

    print("KERNEL_OK")
</pallas_src>

<mosaic_0001>
module attributes {stable_mosaic.version = 11 : i64} {
  func.func @_edgeconv_kernel(%arg0: i32, %arg1: memref<11xi32, #tpu.memory_space<smem>>, %arg2: memref<1x1x128xi32, #tpu.memory_space<vmem>>, %arg3: memref<128x16xf32, #tpu.memory_space<vmem>>, %arg4: memref<64x16xf32, #tpu.memory_space<vmem>>, %arg5: memref<64x1xf32, #tpu.memory_space<vmem>>, %arg6: memref<16x32xf32, #tpu.memory_space<vmem>>, %arg7: memref<16x32xf32, #tpu.memory_space<vmem>>, %arg8: memref<1x32xf32, #tpu.memory_space<vmem>>, %arg9: memref<32x32xf32, #tpu.memory_space<vmem>>, %arg10: memref<1x32xf32, #tpu.memory_space<vmem>>, %arg11: memref<64x32xf32, #tpu.memory_space<vmem>>) attributes {dimension_semantics = [#tpu.dimension_semantics<arbitrary>], iteration_bounds = array<i64: 11>, scalar_prefetch = 1 : i64, scratch_operands = 0 : i64, tpu.core_type = #tpu.core_type<tc>, window_params = [{transform_indices = @transform_0, window_bounds = array<i64: 1, 1, 128>}, {transform_indices = @transform_1, window_bounds = array<i64: 128, 16>}, {transform_indices = @transform_2, window_bounds = array<i64: 64, 16>}, {transform_indices = @transform_3, window_bounds = array<i64: 64, 1>}, {pipeline_mode = #tpu.pipeline_mode<synchronous>, transform_indices = @transform_4, window_bounds = array<i64: 16, 32>}, {pipeline_mode = #tpu.pipeline_mode<synchronous>, transform_indices = @transform_5, window_bounds = array<i64: 16, 32>}, {pipeline_mode = #tpu.pipeline_mode<synchronous>, transform_indices = @transform_6, window_bounds = array<i64: 1, 32>}, {pipeline_mode = #tpu.pipeline_mode<synchronous>, transform_indices = @transform_7, window_bounds = array<i64: 32, 32>}, {pipeline_mode = #tpu.pipeline_mode<synchronous>, transform_indices = @transform_8, window_bounds = array<i64: 1, 32>}, {transform_indices = @transform_9, window_bounds = array<i64: 64, 32>}]} {
    %0 = arith.index_cast %arg0 : i32 to index
    %1 = memref.load %arg1[%0] : memref<11xi32, #tpu.memory_space<smem>>
    %c1_i32 = arith.constant 1 : i32
    %2 = arith.subi %arg0, %c1_i32 : i32
    %c0_i32 = arith.constant 0 : i32
    %3 = arith.maxsi %2, %c0_i32 : i32
    %4 = arith.index_cast %3 : i32 to index
    %5 = memref.load %arg1[%4] : memref<11xi32, #tpu.memory_space<smem>>
    %c1_i32_0 = arith.constant 1 : i32
    %6 = arith.addi %arg0, %c1_i32_0 : i32
    %c10_i32 = arith.constant 10 : i32
    %7 = arith.minsi %6, %c10_i32 : i32
    %8 = arith.index_cast %7 : i32 to index
    %9 = memref.load %arg1[%8] : memref<11xi32, #tpu.memory_space<smem>>
    %c0_i32_1 = arith.constant 0 : i32
    %10 = arith.cmpi eq, %arg0, %c0_i32_1 : i32
    %11 = arith.cmpi ne, %1, %5 : i32
    %12 = arith.ori %10, %11 : i1
    %c10_i32_2 = arith.constant 10 : i32
    %13 = arith.cmpi eq, %arg0, %c10_i32_2 : i32
    %14 = arith.cmpi ne, %1, %9 : i32
    %15 = arith.ori %13, %14 : i1
    %16 = arith.extui %12 : i1 to i32
    %c0_i32_3 = arith.constant 0 : i32
    %17 = arith.cmpi ne, %16, %c0_i32_3 : i32
    scf.if %17 {
      %cst_31 = arith.constant 0.000000e+00 : f32
      %51 = vector.broadcast %cst_31 : f32 to vector<64x32xf32>
      %c0_32 = arith.constant 0 : index
      %c0_33 = arith.constant 0 : index
      %52 = vector.load %arg11[%c0_32, %c0_33] : memref<64x32xf32, #tpu.memory_space<vmem>>, vector<64x32xf32>
      tpu.vector_store %arg11[%c0_32, %c0_33], %51 {strides = array<i32>} : memref<64x32xf32, #tpu.memory_space<vmem>>, vector<64x32xf32>,
    } else {
    }
    %c0 = arith.constant 0 : index
    %c0_4 = arith.constant 0 : index
    %c0_5 = arith.constant 0 : index
    %18 = vector.load %arg2[%c0, %c0_4, %c0_5] : memref<1x1x128xi32, #tpu.memory_space<vmem>>, vector<1x1x128xi32>
    %19 = vector.shape_cast %18 : vector<1x1x128xi32> to vector<1x128xi32>
    %20 = tpu.iota {dimensions = array<i32: 0>} : vector<64x128xi32>
    %21 = vector.broadcast %19 : vector<1x128xi32> to vector<64x128xi32>
    %22 = arith.cmpi eq, %21, %20 : vector<64x128xi32>
    %23 = arith.extui %22 : vector<64x128xi1> to vector<64x128xi32>
    %24 = arith.sitofp %23 : vector<64x128xi32> to vector<64x128xf32>
    %c0_6 = arith.constant 0 : index
    %c0_7 = arith.constant 0 : index
    %25 = vector.load %arg4[%c0_6, %c0_7] : memref<64x16xf32, #tpu.memory_space<vmem>>, vector<64x16xf32>
    %cst = arith.constant dense<0.000000e+00> : vector<128x16xf32>
    %26 = tpu.matmul %24, %25, %cst {dimension_numbers = #tpu.dot_dimension_numbers<[0], [0], [1], [1], [0, 1, 1, 1], [], []>} : vector<64x128xf32>, vector<64x16xf32>, vector<128x16xf32> -> vector<128x16xf32>
    %c0_8 = arith.constant 0 : index
    %c0_9 = arith.constant 0 : index
    %27 = vector.load %arg6[%c0_8, %c0_9] : memref<16x32xf32, #tpu.memory_space<vmem>>, vector<16x32xf32>
    %cst_10 = arith.constant dense<0.000000e+00> : vector<128x32xf32>
    %28 = tpu.matmul %26, %27, %cst_10 {dimension_numbers = #tpu.dot_dimension_numbers<[1], [0], [0], [1], [0, 0, 1, 1], [], []>} : vector<128x16xf32>, vector<16x32xf32>, vector<128x32xf32> -> vector<128x32xf32>
    %c0_11 = arith.constant 0 : index
    %c0_12 = arith.constant 0 : index
    %29 = vector.load %arg3[%c0_11, %c0_12] : memref<128x16xf32, #tpu.memory_space<vmem>>, vector<128x16xf32>
    %c0_13 = arith.constant 0 : index
    %c0_14 = arith.constant 0 : index
    %30 = vector.load %arg7[%c0_13, %c0_14] : memref<16x32xf32, #tpu.memory_space<vmem>>, vector<16x32xf32>
    %cst_15 = arith.constant dense<0.000000e+00> : vector<128x32xf32>
    %31 = tpu.matmul %29, %30, %cst_15 {dimension_numbers = #tpu.dot_dimension_numbers<[1], [0], [0], [1], [0, 0, 1, 1], [], []>} : vector<128x16xf32>, vector<16x32xf32>, vector<128x32xf32> -> vector<128x32xf32>
    %32 = arith.addf %28, %31 : vector<128x32xf32>
    %c0_16 = arith.constant 0 : index
    %c0_17 = arith.constant 0 : index
    %33 = vector.load %arg8[%c0_16, %c0_17] : memref<1x32xf32, #tpu.memory_space<vmem>>, vector<1x32xf32>
    %34 = vector.broadcast %33 : vector<1x32xf32> to vector<128x32xf32>
    %35 = arith.addf %32, %34 : vector<128x32xf32>
    %cst_18 = arith.constant 0.000000e+00 : f32
    %36 = vector.broadcast %cst_18 : f32 to vector<128x32xf32>
    %37 = arith.maximumf %35, %36 : vector<128x32xf32>
    %c0_19 = arith.constant 0 : index
    %c0_20 = arith.constant 0 : index
    %38 = vector.load %arg9[%c0_19, %c0_20] : memref<32x32xf32, #tpu.memory_space<vmem>>, vector<32x32xf32>
    %cst_21 = arith.constant dense<0.000000e+00> : vector<128x32xf32>
    %39 = tpu.matmul %37, %38, %cst_21 {dimension_numbers = #tpu.dot_dimension_numbers<[1], [0], [0], [1], [0, 0, 1, 1], [], []>} : vector<128x32xf32>, vector<32x32xf32>, vector<128x32xf32> -> vector<128x32xf32>
    %c0_22 = arith.constant 0 : index
    %c0_23 = arith.constant 0 : index
    %40 = vector.load %arg10[%c0_22, %c0_23] : memref<1x32xf32, #tpu.memory_space<vmem>>, vector<1x32xf32>
    %41 = vector.broadcast %40 : vector<1x32xf32> to vector<128x32xf32>
    %42 = arith.addf %39, %41 : vector<128x32xf32>
    %cst_24 = arith.constant 0.000000e+00 : f32
    %43 = vector.broadcast %cst_24 : f32 to vector<128x32xf32>
    %44 = arith.maximumf %42, %43 : vector<128x32xf32>
    %c0_25 = arith.constant 0 : index
    %c0_26 = arith.constant 0 : index
    %45 = vector.load %arg11[%c0_25, %c0_26] : memref<64x32xf32, #tpu.memory_space<vmem>>, vector<64x32xf32>
    %cst_27 = arith.constant dense<0.000000e+00> : vector<64x32xf32>
    %46 = tpu.matmul %24, %44, %cst_27 {dimension_numbers = #tpu.dot_dimension_numbers<[1], [0], [0], [1], [0, 0, 1, 1], [], []>} : vector<64x128xf32>, vector<128x32xf32>, vector<64x32xf32> -> vector<64x32xf32>
    %47 = arith.addf %45, %46 : vector<64x32xf32>
    %c0_28 = arith.constant 0 : index
    %c0_29 = arith.constant 0 : index
    %48 = vector.load %arg11[%c0_28, %c0_29] : memref<64x32xf32, #tpu.memory_space<vmem>>, vector<64x32xf32>
    tpu.vector_store %arg11[%c0_28, %c0_29], %47 {strides = array<i32>} : memref<64x32xf32, #tpu.memory_space<vmem>>, vector<64x32xf32>,
    %49 = arith.extui %15 : i1 to i32
    %c0_i32_30 = arith.constant 0 : i32
    %50 = arith.cmpi ne, %49, %c0_i32_30 : i32
    scf.if %50 {
      %c0_31 = arith.constant 0 : index
      %c0_32 = arith.constant 0 : index
      %51 = vector.load %arg11[%c0_31, %c0_32] : memref<64x32xf32, #tpu.memory_space<vmem>>, vector<64x32xf32>
      %c0_33 = arith.constant 0 : index
      %c0_34 = arith.constant 0 : index
      %52 = vector.load %arg5[%c0_33, %c0_34] : memref<64x1xf32, #tpu.memory_space<vmem>>, vector<64x1xf32>
      %53 = vector.broadcast %52 : vector<64x1xf32> to vector<64x32xf32>
      %54 = arith.mulf %51, %53 : vector<64x32xf32>
      %c0_35 = arith.constant 0 : index
      %c0_36 = arith.constant 0 : index
      %55 = vector.load %arg11[%c0_35, %c0_36] : memref<64x32xf32, #tpu.memory_space<vmem>>, vector<64x32xf32>
      tpu.vector_store %arg11[%c0_35, %c0_36], %54 {strides = array<i32>} : memref<64x32xf32, #tpu.memory_space<vmem>>, vector<64x32xf32>,
    } else {
    }
    return
  }
  func.func @transform_0(%arg0: i32, %arg1: memref<11xi32, #tpu.memory_space<smem>>) -> (i32, i32, i32) {
    %c0_i32 = arith.constant 0 : i32
    %c0_i32_0 = arith.constant 0 : i32
    %c0_i32_1 = arith.constant 0 : i32
    return %arg0, %c0_i32, %c0_i32_0 : i32, i32, i32
  }
  func.func @transform_1(%arg0: i32, %arg1: memref<11xi32, #tpu.memory_space<smem>>) -> (i32, i32) {
    %c0_i32 = arith.constant 0 : i32
    %c0_i32_0 = arith.constant 0 : i32
    return %arg0, %c0_i32 : i32, i32
  }
  func.func @transform_2(%arg0: i32, %arg1: memref<11xi32, #tpu.memory_space<smem>>) -> (i32, i32) {
    %0 = arith.index_cast %arg0 : i32 to index
    %1 = memref.load %arg1[%0] : memref<11xi32, #tpu.memory_space<smem>>
    %c0_i32 = arith.constant 0 : i32
    %c0_i32_0 = arith.constant 0 : i32
    return %1, %c0_i32 : i32, i32
  }
  func.func @transform_3(%arg0: i32, %arg1: memref<11xi32, #tpu.memory_space<smem>>) -> (i32, i32) {
    %0 = arith.index_cast %arg0 : i32 to index
    %1 = memref.load %arg1[%0] : memref<11xi32, #tpu.memory_space<smem>>
    %c0_i32 = arith.constant 0 : i32
    %c0_i32_0 = arith.constant 0 : i32
    return %1, %c0_i32 : i32, i32
  }
  func.func @transform_4(%arg0: i32, %arg1: memref<11xi32, #tpu.memory_space<smem>>) -> (i32, i32) {
    %c0_i32 = arith.constant 0 : i32
    %c0_i32_0 = arith.constant 0 : i32
    %c0_i32_1 = arith.constant 0 : i32
    return %c0_i32, %c0_i32_0 : i32, i32
  }
  func.func @transform_5(%arg0: i32, %arg1: memref<11xi32, #tpu.memory_space<smem>>) -> (i32, i32) {
    %c0_i32 = arith.constant 0 : i32
    %c0_i32_0 = arith.constant 0 : i32
    %c0_i32_1 = arith.constant 0 : i32
    return %c0_i32, %c0_i32_0 : i32, i32
  }
  func.func @transform_6(%arg0: i32, %arg1: memref<11xi32, #tpu.memory_space<smem>>) -> (i32, i32) {
    %c0_i32 = arith.constant 0 : i32
    %c0_i32_0 = arith.constant 0 : i32
    %c0_i32_1 = arith.constant 0 : i32
    return %c0_i32, %c0_i32_0 : i32, i32
  }
  func.func @transform_7(%arg0: i32, %arg1: memref<11xi32, #tpu.memory_space<smem>>) -> (i32, i32) {
    %c0_i32 = arith.constant 0 : i32
    %c0_i32_0 = arith.constant 0 : i32
    %c0_i32_1 = arith.constant 0 : i32
    return %c0_i32, %c0_i32_0 : i32, i32
  }
  func.func @transform_8(%arg0: i32, %arg1: memref<11xi32, #tpu.memory_space<smem>>) -> (i32, i32) {
    %c0_i32 = arith.constant 0 : i32
    %c0_i32_0 = arith.constant 0 : i32
    %c0_i32_1 = arith.constant 0 : i32
    return %c0_i32, %c0_i32_0 : i32, i32
  }
  func.func @transform_9(%arg0: i32, %arg1: memref<11xi32, #tpu.memory_space<smem>>) -> (i32, i32) {
    %0 = arith.index_cast %arg0 : i32 to index
    %1 = memref.load %arg1[%0] : memref<11xi32, #tpu.memory_space<smem>>
    %c0_i32 = arith.constant 0 : i32
    %c0_i32_0 = arith.constant 0 : i32
    return %1, %c0_i32 : i32, i32
  }
}

</mosaic_0001>

<bundles_post_ra>
// kernel: tpu_custom_call.1
= control target key start
LH: loop header
LB: loop body
LE: loop exit
PB: predicated region body
PF: predicated region fallthrough
CT: control target
= control target key end

     0   :  { %s2539_s0 = inlined_call_operand.vmem [shape: s32[11], index: 0, kind: input, shape index: {}]   ;;  %s2540_s1 = inlined_call_operand.vmem [shape: s32[11,1,128], index: 1, kind: input, shape index: {}]   ;;  %s2541_s2 = inlined_call_operand.vmem [shape: f32[1408,16], index: 2, kind: input, shape index: {}]   ;;  %s2542_s3 = inlined_call_operand.vmem [shape: f32[192,16], index: 3, kind: input, shape index: {}]   ;;  %s2543_s4 = inlined_call_operand.vmem [shape: f32[192,1], index: 4, kind: input, shape index: {}]   ;;  %s2544_s5 = inlined_call_operand.vmem [shape: f32[16,32], index: 5, kind: input, shape index: {}]   ;;  %s2545_s6 = inlined_call_operand.vmem [shape: f32[16,32], index: 6, kind: input, shape index: {}]   ;;  %s2546_s7 = inlined_call_operand.vmem [shape: f32[1,32], index: 7, kind: input, shape index: {}]   ;;  %s2547_s8 = inlined_call_operand.vmem [shape: f32[32,32], index: 8, kind: input, shape index: {}]   ;;  %s2548_s9 = inlined_call_operand.vmem [shape: f32[1,32], index: 9, kind: input, shape index: {}]   ;;  %s2549_s10 = inlined_call_operand.vmem [shape: f32[192,32], index: 10, kind: output, shape index: {}]  }
   0x1   :  { %s15_s15 = sshll.u32 %s2539_s0, 4  ;;  %s16_s15 = int_to_ptr.vmem [resolvable:$true] %s15_s15 }
   0x2   :  { %s2072_s16 = scalar_lea.vmem %s16_s15, 16  ;;  %p2077_p1 = scmp.lt.s32.totalorder %s16_s15, %s16_s15 }
   0x3   :  { %p2073_p0 = scmp.ne.s32.totalorder %s16_s15, %s2072_s16  ;;  %p2078_p2 = scmp.lt.s32.totalorder %s2072_s16, %s2072_s16 }
   0x5   :  { %p2079_p3 = por %p2078_p2, %p2077_p1 }
   0x7   :  { %p2080_p4 = pnand %p2079_p3, %p2073_p0 }
   0x9   :  { %2083 = shalt.err (!%p2080_p4)  }
   0xa   :  { %s2094_s17 = smov [#allocation3]  }
   0xb   :  { %18 = dma.vmem_to_smem %s16_s15, 16, %s2094_s17, [#allocation2] }
   0xc   :  { %2088 = dma.done.wait [#allocation2], 16 }
   0xd   :  { %2089 = vsyncadd [#allocation2], 4294967280 }
   0xe   :  { %20 = sfence }
   0xf   :  { %s2157_s18 = smov 0  }
  0x10 LB: > { %s2163_s0 = sadd.s32 4294967295, %s2092_s18   ;;  %p1686_p5 = scmp.ge.s32.totalorder %s2092_s18, 1  ;;  %s2092_s18 = sphi %s2157_s18, %s26_s18  }
  0x11   : > { %p335_p6 = scmp.lt.s32.totalorder %s2092_s18, 12 }
  0x13   : > { %p336_p7 = pnand %p1686_p5, %p335_p6 }
  0x14   : > { %p387_p8 = scmp.lt.s32.totalorder (!%p336_p7), %s2163_s0, 10  ;;  %s1687_s19 = sshll.u32 (!%p336_p7), %s2163_s0, 4 }
  0x15   : > { %339 = sbr.rel (%p336_p7) target bundleno = 1090 (0x442), region = 56  ;;  %p391_p9 = scmp.lt.s32.totalorder (!%p336_p7), %s1687_s19, 175 }
  0x16   : > { %s396_s20 = sld [smem:[#allocation3 + %s2163_s0]] (!%p336_p7)  ;;  %s1695_s12 = sadd.s32 (!%p336_p7), 4294967295, %s2163_s0 }
  0x17   : > { %s404_s25 = sld [smem:[#allocation3 + %s2163_s0]] (!%p336_p7)  ;;  %p2185_p11 = scmp.gt.s32.totalorder (!%p336_p7), %s1695_s12, 0 }
  0x18   : > { %s412_s27 = sld [smem:[#allocation3 + %s2163_s0]] (!%p336_p7)  ;;  %s425_s14 = sadd.s32 (!%p336_p7), 1, %s2163_s0 }
  0x19   : > { %p426_p0 = scmp.lt.s32.totalorder (!%p336_p7), %s425_s14, 10  ;;  %p429_p1 = scmp.eq.s32.totalorder (!%p336_p7), %s2163_s0, 0 }
  0x1a   : > { %s2171_s21 = scalar_select %p387_p8, %s2163_s0, 10 }
  0x1b   : > { %s2554_s19 = smov (!%p391_p9, %s1687_s19), 175  ;;  %s2562_s12 = smov (!%p2185_p11, %s1695_s12), 0 }
  0x1c   : > { %s1688_s26 = sshll.u32 %s2554_s19, 3  ;;  %s1689_s11 = sshll.u32 %s396_s20, 3 }
  0x1d   : > { %s2182_s30 = scalar_lea.vmem %s2541_s2, %s1688_s26  ;;  %p398_p10 = scmp.lt.s32.totalorder %s1689_s11, 23 }
  0x1e   : > { %s1691_s15 = sshll.u32 %s404_s25, 3  ;;  %s1693_s16 = sshll.u32 %s412_s27, 3 }
  0x1f   : > { %s2556_s11 = smov (!%p398_p10, %s1689_s11), 23  ;;  %p406_p12 = scmp.lt.s32.totalorder %s1691_s15, 23 }
  0x20   : > { %s1690_s17 = sshll.u32 %s2556_s11, 3  ;;  %p414_p13 = scmp.lt.s32.totalorder %s1693_s16, 23 }
  0x21   : > { %s2193_s20 = scalar_lea.vmem %s2542_s3, %s1690_s17  ;;  %s2558_s15 = smov (!%p406_p12, %s1691_s15), 23 }
  0x22   : > { %s2560_s16 = smov (!%p414_p13, %s1693_s16), 23  ;;  %s1692_s23 = sshll.u32 %s2558_s15, 3 }
  0x23   : > { %s2198_s29 = scalar_lea.vmem %s2543_s4, %s1692_s23  ;;  %s1694_s25 = sshll.u32 %s2560_s16, 3 }
  0x24   : > { %s2203_s24 = scalar_lea.vmem %s2549_s10, %s1694_s25  ;;  %s420_s19 = sld [smem:[#allocation3 + %s2163_s0]] }
  0x25   : > { %s2564_s14 = smov (!%p426_p0, %s425_s14), 10  ;;  %s424_s17 = sld [smem:[#allocation3 + %s2562_s12]] }
  0x26   : > { %s428_s22 = sld [smem:[#allocation3 + %s2564_s14]]  ;;  %p432_p2 = scmp.eq.s32.totalorder %s2163_s0, 10 }
  0x2b   : > { %p430_p3 = scmp.ne.s32.totalorder %s420_s19, %s424_s17 }
  0x2c   : > { %p433_p4 = scmp.ne.s32.totalorder %s420_s19, %s428_s22 }
  0x2d   : > { %p431_p5 = por %p430_p3, %p429_p1 }
  0x2e   : > { %p2210_p6 = por %p433_p4, %p432_p2  ;;  %vm438_vm0 = vcmask (%p431_p5), 261120   ;;  %v2095_v0 = vmov (%p431_p5), 0.0  }
  0x2f   : > { %437 = sbr.rel (!%p431_p5) target bundleno = 52 (0x34), region = 60  ;;  %439 = vst.msk [vmem:[%s2203_s24] sm:$0xff] (%p431_p5), %vm438_vm0, %v2095_v0  ;;  %440 = vst.msk [vmem:[%s2203_s24 + $0x8] sm:$0xff] (%p431_p5), %vm438_vm0, %v2095_v0 }
  0x30   : > { %441 = vst.msk [vmem:[%s2203_s24 + $0x10] sm:$0xff] (%p431_p5), %vm438_vm0, %v2095_v0  ;;  %442 = vst.msk [vmem:[%s2203_s24 + $0x18] sm:$0xff] (%p431_p5), %vm438_vm0, %v2095_v0 }
  0x31   : > { %443 = vst.msk [vmem:[%s2203_s24 + $0x20] sm:$0xff] (%p431_p5), %vm438_vm0, %v2095_v0  ;;  %444 = vst.msk [vmem:[%s2203_s24 + $0x28] sm:$0xff] (%p431_p5), %vm438_vm0, %v2095_v0 }
  0x32   : > { %445 = vst.msk [vmem:[%s2203_s24 + $0x30] sm:$0xff] (%p431_p5), %vm438_vm0, %v2095_v0  ;;  %446 = vst.msk [vmem:[%s2203_s24 + $0x38] sm:$0xff] (%p431_p5), %vm438_vm0, %v2095_v0 }
  0x34 PF: > { %v448_v1 = vlaneseq  ;;  %v492_v2 = vld [vmem:[%s2193_s20 + $0x38] sm:$0xff]  ;;  %v491_v3 = vld [vmem:[%s2193_s20 + $0x30] sm:$0xff]  ;;  %s2552_s13 = scalar_lea.vmem %s2540_s1, %s2171_s21  ;;  %v490_v6 = vld [vmem:[%s2193_s20 + $0x28] sm:$0xff]  ;;  %v2096_v10 = vmov 0.0   ;;  %vm739_vm9 = vcmask 130048   ;;  %vm525_vm10 = vcmask 523264  }
  0x35   : > { %v2229_v4 = vld [vmem:[%s2552_s13] ss:$0 sm:$0xff]  ;;  %1885 = vmatprep.subr.mxu0 %v492_v2  ;;  %v488_v12 = vld [vmem:[%s2193_s20 + $0x18] sm:$0xff]  ;;  %v487_v15 = vld [vmem:[%s2193_s20 + $0x10] sm:$0xff]  ;;  %vm1176_vm11 = vcmask 261120  }
  0x36   : > { %v2231_v5 = vshrl.u32 %v448_v1, 7  ;;  %1886 = vmatpush3.msra.mxu0 %v492_v2  ;;  %v489_v9 = vld [vmem:[%s2193_s20 + $0x20] sm:$0xff]  ;;  %v486_v16 = vld [vmem:[%s2193_s20 + $0x8] sm:$0xff]  ;;  %v723_v32 = vld [vmem:[%s2182_s30 + $0x10] sm:$0xff] }
  0x37   : > { %1887 = vmatprep.subr.mxu0 %v491_v3  ;;  %v485_v19 = vld [vmem:[%s2193_s20] sm:$0xff]  ;;  %v738_v28 = vld [vmem:[%s2545_s6 + $0x8] sm:$0xff]  ;;  %v724_v33 = vld [vmem:[%s2182_s30 + $0x18] sm:$0xff] }
  0x38   : > { %vm461_vm1 = vcmp.eq.s32.totalorder %v2229_v4, %v2231_v5  ;;  %v2237_v7 = vadd.s32 8, %v2231_v5  ;;  %v2240_v8 = vadd.s32 16, %v2231_v5  ;;  %1888 = vmatpush3.msra.mxu0 %v491_v3  ;;  %v2255_v14 = vadd.s32 24, %v2231_v5  ;;  %v737_v29 = vld [vmem:[%s2545_s6] sm:$0xff]  ;;  %1925 = vmatprep.subr.mxu1 %v738_v28  ;;  %v722_v31 = vld [vmem:[%s2182_s30 + $0x8] sm:$0xff]  ;;  %v727_v36 = vld [vmem:[%s2182_s30 + $0x30] sm:$0xff] }
  0x39   : > { %v1697_v11 = vsel %vm461_vm1, 1.0, %v2096_v10  ;;  %1889 = vmatprep.subr.mxu0 %v490_v6  ;;  %v2265_v18 = vadd.s32 32, %v2231_v5  ;;  %v2274_v21 = vadd.s32 40, %v2231_v5  ;;  %v2282_v23 = vadd.s32 48, %v2231_v5  ;;  %v721_v30 = vld [vmem:[%s2182_s30] sm:$0xff]  ;;  %1926 = vmatpush3.msra.mxu1 %v738_v28  ;;  %v726_v35 = vld [vmem:[%s2182_s30 + $0x28] sm:$0xff] }
  0x3a   : > { %493 = vxpose.xlu0.b32.start [1/8] (short) %v1697_v11, 128  ;;  %vm462_vm2 = vcmp.eq.s32.totalorder %v2229_v4, %v2237_v7  ;;  %1890 = vmatpush3.msra.mxu0 %v490_v6  ;;  %vm463_vm3 = vcmp.eq.s32.totalorder %v2229_v4, %v2240_v8  ;;  %vm464_vm4 = vcmp.eq.s32.totalorder %v2229_v4, %v2255_v14  ;;  %v2290_v25 = vadd.s32 56, %v2231_v5  ;;  %v725_v34 = vld [vmem:[%s2182_s30 + $0x20] sm:$0xff]  ;;  %v728_v37 = vld [vmem:[%s2182_s30 + $0x38] sm:$0xff]  ;;  %v730_v39 = vld [vmem:[%s2182_s30 + $0x48] sm:$0xff] }
  0x3b   : > { %v1698_v13 = vsel %vm462_vm2, 1.0, %v2096_v10  ;;  %1891 = vmatprep.subr.mxu0 %v489_v9  ;;  %v1699_v17 = vsel %vm463_vm3, 1.0, %v2096_v10  ;;  %v1700_v20 = vsel %vm464_vm4, 1.0, %v2096_v10  ;;  %vm465_vm5 = vcmp.eq.s32.totalorder %v2229_v4, %v2265_v18  ;;  %1929 = vmatprep.mubr.msk.f32.mxu1 %vm739_vm9, %v721_v30  ;;  %v729_v38 = vld [vmem:[%s2182_s30 + $0x40] sm:$0xff]  ;;  %v731_v40 = vld [vmem:[%s2182_s30 + $0x50] sm:$0xff]  ;;  %v732_v41 = vld [vmem:[%s2182_s30 + $0x58] sm:$0xff] }
  0x3c   : > { %1892 = vmatpush3.msra.mxu0 %v489_v9  ;;  %v1701_v22 = vsel %vm465_vm5, 1.0, %v2096_v10  ;;  %vm466_vm6 = vcmp.eq.s32.totalorder %v2229_v4, %v2274_v21  ;;  %vm467_vm7 = vcmp.eq.s32.totalorder %v2229_v4, %v2282_v23  ;;  %vm468_vm8 = vcmp.eq.s32.totalorder %v2229_v4, %v2290_v25  ;;  %1927 = vmatprep.subr.mxu1 %v737_v29  ;;  %v733_v42 = vld [vmem:[%s2182_s30 + $0x60] sm:$0xff]  ;;  %v734_v43 = vld [vmem:[%s2182_s30 + $0x68] sm:$0xff]  ;;  %v735_v44 = vld [vmem:[%s2182_s30 + $0x70] sm:$0xff] }
  0x3d   : > { %1893 = vmatprep.subr.mxu0 %v488_v12  ;;  %v1702_v24 = vsel %vm466_vm6, 1.0, %v2096_v10  ;;  %v1703_v26 = vsel %vm467_vm7, 1.0, %v2096_v10  ;;  %v1704_v27 = vsel %vm468_vm8, 1.0, %v2096_v10  ;;  %1928 = vmatpush3.msra.mxu1 %v737_v29  ;;  %v736_v61 = vld [vmem:[%s2182_s30 + $0x78] sm:$0xff]  ;;  %v720_v62 = vld [vmem:[%s2544_s5 + $0x8] sm:$0xff]  ;;  %v719_v63 = vld [vmem:[%s2544_s5] sm:$0xff] }
  0x3e   : > { %494 = vxpose.xlu0.b32.cont [2/8] (short) %v1698_v13, 128  ;;  %1894 = vmatpush3.msra.mxu0 %v488_v12  ;;  %v1165_v28 = vld [vmem:[%s2547_s8] sm:$0xff]  ;;  %v1387_v7 = vld [vmem:[%s2203_s24 + $0x8] sm:$0xff] }
  0x3f   : > { %1895 = vmatprep.subr.mxu0 %v487_v15  ;;  %1930 = vmatmul.mubr.msk.f32.vlgmr.msra.gmra.mxu1 %vm739_vm9, %v722_v31  ;;  %v1754_v5 = vld [vmem:[%s2548_s9] ss:$0 sm:$0xff] }
  0x40   : > { %1896 = vmatpush3.msra.mxu0 %v487_v15  ;;  %1932 = vmatprep.mubr.msk.f32.mxu1 %vm739_vm9, %v723_v32  ;;  %v1386_v14 = vld [vmem:[%s2203_s24] sm:$0xff] }
  0x41   : > { %1897 = vmatprep.subr.mxu0 %v486_v16  ;;  %1953 = vmatprep.subr.mxu1 %v720_v62 }
  0x42   : > { %495 = vxpose.xlu0.b32.cont [3/8] (short) %v1699_v17, 128  ;;  %1898 = vmatpush3.msra.mxu0 %v486_v16 }
  0x43   : > { %1899 = vmatprep.subr.mxu0 %v485_v19  ;;  %1933 = vmatmul.mubr.msk.f32.gmra.mxu1 %vm739_vm9, %v724_v33 }
  0x44   : > { %1900 = vmatpush3.msra.mxu0 %v485_v19  ;;  %1935 = vmatprep.mubr.msk.f32.mxu1 %vm739_vm9, %v725_v34 }
  0x45   : > { %1954 = vmatpush3.msra.mxu1 %v720_v62 }
  0x46   : > { %496 = vxpose.xlu0.b32.cont [4/8] (short) %v1700_v20, 128  ;;  %1955 = vmatprep.subr.mxu1 %v719_v63 }
  0x47   : > { %1936 = vmatmul.mubr.msk.f32.gmra.mxu1 %vm739_vm9, %v726_v35 }
  0x48   : > { %1938 = vmatprep.mubr.msk.f32.mxu1 %vm739_vm9, %v727_v36  ;;  %1956 = vmatpush3.msra.mxu1 %v719_v63 }
  0x4a   : > { %497 = vxpose.xlu0.b32.cont [5/8] (short) %v1701_v22, 128 }
  0x4b   : > { %1939 = vmatmul.mubr.msk.f32.gmra.mxu1 %vm739_vm9, %v728_v37 }
  0x4c   : > { %1941 = vmatprep.mubr.msk.f32.mxu1 %vm739_vm9, %v729_v38 }
  0x4e   : > { %498 = vxpose.xlu0.b32.cont [6/8] (short) %v1702_v24, 128  ;;  %v1168_v24 = vld [vmem:[%s2547_s8 + $0x18] sm:$0xff] }
  0x4f   : > { %1942 = vmatmul.mubr.msk.f32.gmra.mxu1 %vm739_vm9, %v730_v39  ;;  %1981 = vmatprep.subr.mxu0 %v1168_v24 }
  0x50   : > { %1944 = vmatprep.mubr.msk.f32.mxu1 %vm739_vm9, %v731_v40 }
  0x52   : > { %499 = vxpose.xlu0.b32.cont [7/8] (short) %v1703_v26, 128  ;;  %v1167_v26 = vld [vmem:[%s2547_s8 + $0x10] sm:$0xff] }
  0x53   : > { %1945 = vmatmul.mubr.msk.f32.gmra.mxu1 %vm739_vm9, %v732_v41 }
  0x54   : > { %1947 = vmatprep.mubr.msk.f32.mxu1 %vm739_vm9, %v733_v42 }
  0x56   : > { %500 = vxpose.xlu0.b32.end [8/8] (short) %v1704_v27, 128  ;;  %v1166_v27 = vld [vmem:[%s2547_s8 + $0x8] sm:$0xff] }
  0x57   : > { %1948 = vmatmul.mubr.msk.f32.gmra.mxu1 %vm739_vm9, %v734_v43 }
  0x58   : > { %1950 = vmatprep.mubr.msk.f32.mxu1 %vm739_vm9, %v735_v44 }
  0x5b   : > { %1951 = vmatmul.mubr.msk.f32.gmra.mxu1 %vm739_vm9, %v736_v61 }
  0xb6   : > { %v509_v45 = vpop.trf.xlu0 }
  0xb7   : > { %1901 = vmatprep.mubr.msk.f32.mxu0 %vm525_vm10, %v509_v45 }
  0xba   : > { %v510_v46 = vpop.trf.xlu0 }
  0xbb   : > { %1902 = vmatmul.mubr.msk.f32.vlgmr.msra.gmra.mxu0 %vm525_vm10, %v510_v46 }
  0xbc   : > { %1982 = vmatpush3.msra.mxu0 %v1168_v24 }
  0xbd   : > { %1983 = vmatprep.subr.mxu0 %v1167_v26 }
  0xbe   : > { %v511_v47 = vpop.trf.xlu0  ;;  %1984 = vmatpush3.msra.mxu0 %v1167_v26 }
  0xbf   : > { %1904 = vmatprep.mubr.msk.f32.mxu0 %vm525_vm10, %v511_v47  ;;  %1985 = vmatprep.subr.mxu0 %v1166_v27  ;;  %v2399_v47 = vld [vmem:[%s2546_s7] ss:$0 sm:$0xff] }
  0xc0   : > { %1986 = vmatpush3.msra.mxu0 %v1166_v27 }
  0xc1   : > { %1987 = vmatprep.subr.mxu0 %v1165_v28 }
  0xc2   : > { %v512_v48 = vpop.trf.xlu0  ;;  %1988 = vmatpush3.msra.mxu0 %v1165_v28 }
  0xc3   : > { %1905 = vmatmul.mubr.msk.f32.gmra.mxu0 %vm525_vm10, %v512_v48 }
  0xc6   : > { %v513_v49 = vpop.trf.xlu0 }
  0xc7   : > { %1907 = vmatprep.mubr.msk.f32.mxu0 %vm525_vm10, %v513_v49 }
  0xca   : > { %v514_v50 = vpop.trf.xlu0 }
  0xcb   : > { %1908 = vmatmul.mubr.msk.f32.gmra.mxu0 %vm525_vm10, %v514_v50 }
  0xce   : > { %v515_v51 = vpop.trf.xlu0 }
  0xcf   : > { %1910 = vmatprep.mubr.msk.f32.mxu0 %vm525_vm10, %v515_v51 }
  0xd2   : > { %v516_v52 = vpop.trf.xlu0 }
  0xd3   : > { %1911 = vmatmul.mubr.msk.f32.gmra.mxu0 %vm525_vm10, %v516_v52 }
  0xd6   : > { %v517_v53 = vpop.trf.xlu0 }
  0xd7   : > { %1913 = vmatprep.mubr.msk.f32.mxu0 %vm525_vm10, %v517_v53 }
  0xda   : > { %v518_v54 = vpop.trf.xlu0 }
  0xdb   : > { %1914 = vmatmul.mubr.msk.f32.gmra.mxu0 %vm525_vm10, %v518_v54 }
  0xde   : > { %v519_v55 = vpop.trf.xlu0 }
  0xdf   : > { %1916 = vmatprep.mubr.msk.f32.mxu0 %vm525_vm10, %v519_v55 }
  0xe2   : > { %v520_v56 = vpop.trf.xlu0 }
  0xe3   : > { %1917 = vmatmul.mubr.msk.f32.gmra.mxu0 %vm525_vm10, %v520_v56 }
  0xe6   : > { %v521_v57 = vpop.trf.xlu0 }
  0xe7   : > { %1919 = vmatprep.mubr.msk.f32.mxu0 %vm525_vm10, %v521_v57 }
  0xea   : > { %v522_v58 = vpop.trf.xlu0 }
  0xeb   : > { %1920 = vmatmul.mubr.msk.f32.gmra.mxu0 %vm525_vm10, %v522_v58 }
  0xee   : > { %v523_v59 = vpop.trf.xlu0 }
  0xef   : > { %1922 = vmatprep.mubr.msk.f32.mxu0 %vm525_vm10, %v523_v59 }
  0xf2   : > { %v524_v60 = vpop.trf.xlu0 }
  0xf3   : > { %1923 = vmatmul.mubr.msk.f32.gmra.mxu0 %vm525_vm10, %v524_v60 }
  0xff   : > { %v1931_v29 = vpop.f32.mrf.mxu1 }
 0x101   : > { %v854_v30 = vpop.f32.mrf.mxu1 }
 0x103   : > { %v1934_v31 = vpop.f32.mrf.mxu1 }
 0x105   : > { %v864_v32 = vpop.f32.mrf.mxu1 }
 0x107   : > { %v1937_v33 = vpop.f32.mrf.mxu1 }
 0x109   : > { %v874_v34 = vpop.f32.mrf.mxu1 }
 0x10b   : > { %v1940_v35 = vpop.f32.mrf.mxu1 }
 0x10d   : > { %v884_v36 = vpop.f32.mrf.mxu1 }
 0x10f   : > { %v1943_v37 = vpop.f32.mrf.mxu1 }
 0x111   : > { %v894_v38 = vpop.f32.mrf.mxu1 }
 0x113   : > { %v1946_v39 = vpop.f32.mrf.mxu1 }
 0x115   : > { %v904_v40 = vpop.f32.mrf.mxu1 }
 0x117   : > { %v2388_v41 = vpop.f32.mrf.mxu1 }
 0x119   : > { %v2390_v42 = vpop.f32.mrf.mxu1 }
 0x11b   : > { %v2392_v43 = vpop.f32.mrf.mxu1 }
 0x11d   : > { %v2394_v44 = vpop.f32.mrf.mxu1 }
 0x17b   : > { %v1903_v0 = vpop.f32.mrf.mxu0 }
 0x17d   : > { %v640_v1 = vpop.f32.mrf.mxu0 }
 0x17e   : > { %1957 = vmatprep.mubr.msk.f32.mxu1 %vm739_vm9, %v640_v1 }
 0x17f   : > { %1958 = vmatmul.mubr.msk.f32.vlgmr.msra.gmra.mxu1 %vm739_vm9, %v1903_v0 }
 0x183   : > { %v1906_v2 = vpop.f32.mrf.mxu0 }
 0x185   : > { %v650_v3 = vpop.f32.mrf.mxu0 }
 0x186   : > { %1960 = vmatprep.mubr.msk.f32.mxu1 %vm739_vm9, %v650_v3 }
 0x187   : > { %1961 = vmatmul.mubr.msk.f32.gmra.mxu1 %vm739_vm9, %v1906_v2 }
 0x18b   : > { %v1909_v6 = vpop.f32.mrf.mxu0 }
 0x18d   : > { %v660_v9 = vpop.f32.mrf.mxu0 }
 0x18e   : > { %1963 = vmatprep.mubr.msk.f32.mxu1 %vm739_vm9, %v660_v9 }
 0x18f   : > { %1964 = vmatmul.mubr.msk.f32.gmra.mxu1 %vm739_vm9, %v1909_v6 }
 0x193   : > { %v1912_v10 = vpop.f32.mrf.mxu0 }
 0x195   : > { %v670_v11 = vpop.f32.mrf.mxu0 }
 0x196   : > { %1966 = vmatprep.mubr.msk.f32.mxu1 %vm739_vm9, %v670_v11 }
 0x197   : > { %1967 = vmatmul.mubr.msk.f32.gmra.mxu1 %vm739_vm9, %v1912_v10 }
 0x19b   : > { %v1915_v12 = vpop.f32.mrf.mxu0 }
 0x19d   : > { %v680_v13 = vpop.f32.mrf.mxu0 }
 0x19e   : > { %1969 = vmatprep.mubr.msk.f32.mxu1 %vm739_vm9, %v680_v13 }
 0x19f   : > { %1970 = vmatmul.mubr.msk.f32.gmra.mxu1 %vm739_vm9, %v1915_v12 }
 0x1a3   : > { %v1918_v15 = vpop.f32.mrf.mxu0 }
 0x1a5   : > { %v690_v16 = vpop.f32.mrf.mxu0 }
 0x1a6   : > { %1972 = vmatprep.mubr.msk.f32.mxu1 %vm739_vm9, %v690_v16 }
 0x1a7   : > { %1973 = vmatmul.mubr.msk.f32.gmra.mxu1 %vm739_vm9, %v1918_v15 }
 0x1ab   : > { %v1921_v17 = vpop.f32.mrf.mxu0 }
 0x1ad   : > { %v700_v19 = vpop.f32.mrf.mxu0 }
 0x1ae   : > { %1975 = vmatprep.mubr.msk.f32.mxu1 %vm739_vm9, %v700_v19 }
 0x1af   : > { %1976 = vmatmul.mubr.msk.f32.gmra.mxu1 %vm739_vm9, %v1921_v17 }
 0x1b3   : > { %v1924_v20 = vpop.f32.mrf.mxu0 }
 0x1b5   : > { %v710_v22 = vpop.f32.mrf.mxu0 }
 0x1b6   : > { %1978 = vmatprep.mubr.msk.f32.mxu1 %vm739_vm9, %v710_v22 }
 0x1b7   : > { %1979 = vmatmul.mubr.msk.f32.gmra.mxu1 %vm739_vm9, %v1924_v20 }
 0x23f   : > { %v1959_v45 = vpop.f32.mrf.mxu1 }
 0x240   : > { %v1053_v46 = vadd.f32 %v1959_v45, %v1931_v29 }
 0x241   : > { %v1047_v48 = vpop.f32.mrf.mxu1 }
 0x242   : > { %v1048_v49 = vadd.f32 %v1047_v48, %v854_v30  ;;  %v1134_v50 = vadd.f32 %v2399_v47, %v1053_v46 }
 0x244   : > { %v1133_v51 = vadd.f32 %v2399_v47, %v1048_v49  ;;  %v1150_v53 = vmax.f32 %v1134_v50, 0.0 }
 0x246   : > { %v1149_v52 = vmax.f32 %v1133_v51, 0.0 }
 0x247   : > { %v1962_v54 = vpop.f32.mrf.mxu1 }
 0x248   : > { %v1063_v55 = vadd.f32 %v1962_v54, %v1934_v31  ;;  %1989 = vmatprep.mubr.msk.f32.mxu0 %vm1176_vm11, %v1149_v52 }
 0x249   : > { %v1057_v56 = vpop.f32.mrf.mxu1  ;;  %1990 = vmatmul.mubr.msk.f32.vlgmr.msra.gmra.mxu0 %vm1176_vm11, %v1150_v53 }
 0x24a   : > { %v1058_v57 = vadd.f32 %v1057_v56, %v864_v32  ;;  %v1136_v58 = vadd.f32 %v2399_v47, %v1063_v55 }
 0x24c   : > { %v1135_v59 = vadd.f32 %v2399_v47, %v1058_v57  ;;  %v1152_v61 = vmax.f32 %v1136_v58, 0.0  ;;  %v2097_v58 = vmov 1.0  }
 0x24d   : > { %2045 = vmatprep.mubr.msk.f32.mxu1 %vm461_vm1, %v2097_v58 }
 0x24e   : > { %v1151_v60 = vmax.f32 %v1135_v59, 0.0 }
 0x24f   : > { %v1965_v62 = vpop.f32.mrf.mxu1 }
 0x250   : > { %v1073_v63 = vadd.f32 %v1965_v62, %v1937_v33  ;;  %1992 = vmatprep.mubr.msk.f32.mxu0 %vm1176_vm11, %v1151_v60 }
 0x251   : > { %v1067_v0 = vpop.f32.mrf.mxu1  ;;  %1993 = vmatmul.mubr.msk.f32.gmra.mxu0 %vm1176_vm11, %v1152_v61 }
 0x252   : > { %v1068_v1 = vadd.f32 %v1067_v0, %v874_v34  ;;  %v1138_v2 = vadd.f32 %v2399_v47, %v1073_v63 }
 0x254   : > { %v1137_v3 = vadd.f32 %v2399_v47, %v1068_v1  ;;  %v1154_v9 = vmax.f32 %v1138_v2, 0.0 }
 0x256   : > { %v1153_v6 = vmax.f32 %v1137_v3, 0.0 }
 0x257   : > { %v1968_v10 = vpop.f32.mrf.mxu1 }
 0x258   : > { %v1083_v11 = vadd.f32 %v1968_v10, %v1940_v35  ;;  %1995 = vmatprep.mubr.msk.f32.mxu0 %vm1176_vm11, %v1153_v6 }
 0x259   : > { %v1077_v12 = vpop.f32.mrf.mxu1  ;;  %1996 = vmatmul.mubr.msk.f32.gmra.mxu0 %vm1176_vm11, %v1154_v9 }
 0x25a   : > { %v1078_v13 = vadd.f32 %v1077_v12, %v884_v36  ;;  %v1140_v15 = vadd.f32 %v2399_v47, %v1083_v11 }
 0x25c   : > { %v1139_v16 = vadd.f32 %v2399_v47, %v1078_v13  ;;  %v1156_v19 = vmax.f32 %v1140_v15, 0.0 }
 0x25e   : > { %v1155_v17 = vmax.f32 %v1139_v16, 0.0 }
 0x25f   : > { %v1971_v20 = vpop.f32.mrf.mxu1 }
 0x260   : > { %v1093_v22 = vadd.f32 %v1971_v20, %v1943_v37  ;;  %1998 = vmatprep.mubr.msk.f32.mxu0 %vm1176_vm11, %v1155_v17 }
 0x261   : > { %v1087_v24 = vpop.f32.mrf.mxu1  ;;  %1999 = vmatmul.mubr.msk.f32.gmra.mxu0 %vm1176_vm11, %v1156_v19 }
 0x262   : > { %v1088_v26 = vadd.f32 %v1087_v24, %v894_v38  ;;  %v1142_v27 = vadd.f32 %v2399_v47, %v1093_v22 }
 0x264   : > { %v1141_v28 = vadd.f32 %v2399_v47, %v1088_v26  ;;  %v1158_v30 = vmax.f32 %v1142_v27, 0.0 }
 0x266   : > { %v1157_v29 = vmax.f32 %v1141_v28, 0.0 }
 0x267   : > { %v1974_v31 = vpop.f32.mrf.mxu1 }
 0x268   : > { %v1103_v32 = vadd.f32 %v1974_v31, %v1946_v39  ;;  %2001 = vmatprep.mubr.msk.f32.mxu0 %vm1176_vm11, %v1157_v29 }
 0x269   : > { %v1097_v33 = vpop.f32.mrf.mxu1  ;;  %2002 = vmatmul.mubr.msk.f32.gmra.mxu0 %vm1176_vm11, %v1158_v30 }
 0x26a   : > { %v1098_v34 = vadd.f32 %v1097_v33, %v904_v40  ;;  %v1144_v35 = vadd.f32 %v2399_v47, %v1103_v32 }
 0x26c   : > { %v1143_v36 = vadd.f32 %v2399_v47, %v1098_v34  ;;  %v1160_v38 = vmax.f32 %v1144_v35, 0.0 }
 0x26e   : > { %v1159_v37 = vmax.f32 %v1143_v36, 0.0 }
 0x26f   : > { %v1977_v45 = vpop.f32.mrf.mxu1 }
 0x270   : > { %v1113_v46 = vadd.f32 %v1977_v45, %v2388_v41  ;;  %2004 = vmatprep.mubr.msk.f32.mxu0 %vm1176_vm11, %v1159_v37 }
 0x271   : > { %v1107_v48 = vpop.f32.mrf.mxu1  ;;  %2005 = vmatmul.mubr.msk.f32.gmra.mxu0 %vm1176_vm11, %v1160_v38 }
 0x272   : > { %v1108_v39 = vadd.f32 %v1107_v48, %v2390_v42  ;;  %v1146_v49 = vadd.f32 %v2399_v47, %v1113_v46 }
 0x274   : > { %v1145_v40 = vadd.f32 %v2399_v47, %v1108_v39  ;;  %v1162_v51 = vmax.f32 %v1146_v49, 0.0 }
 0x276   : > { %v1161_v50 = vmax.f32 %v1145_v40, 0.0 }
 0x277   : > { %v1980_v52 = vpop.f32.mrf.mxu1 }
 0x278   : > { %v1123_v53 = vadd.f32 %v1980_v52, %v2392_v43  ;;  %2007 = vmatprep.mubr.msk.f32.mxu0 %vm1176_vm11, %v1161_v50 }
 0x279   : > { %v1117_v54 = vpop.f32.mrf.mxu1  ;;  %2008 = vmatmul.mubr.msk.f32.gmra.mxu0 %vm1176_vm11, %v1162_v51 }
 0x27a   : > { %v1118_v41 = vadd.f32 %v1117_v54, %v2394_v44  ;;  %v1148_v55 = vadd.f32 %v2399_v47, %v1123_v53  ;;  %v1389_v54 = vld [vmem:[%s2203_s24 + $0x18] sm:$0xff] }
 0x27c   : > { %v1147_v42 = vadd.f32 %v2399_v47, %v1118_v41  ;;  %v1164_v57 = vmax.f32 %v1148_v55, 0.0  ;;  %v1388_v55 = vld [vmem:[%s2203_s24 + $0x10] sm:$0xff] }
 0x27e   : > { %v1163_v56 = vmax.f32 %v1147_v42, 0.0  ;;  %v1391_v42 = vld [vmem:[%s2203_s24 + $0x28] sm:$0xff] }
 0x280   : > { %2010 = vmatprep.mubr.msk.f32.mxu0 %vm1176_vm11, %v1163_v56 }
 0x281   : > { %2011 = vmatmul.mubr.msk.f32.gmra.mxu0 %vm1176_vm11, %v1164_v57 }
 0x309   : > { %v2441_v43 = vpop.f32.mrf.mxu0 }
 0x30a   : > { %v1297_v49 = vadd.f32 %v2441_v43, %v1754_v5 }
 0x30b   : > { %v2443_v59 = vpop.f32.mrf.mxu0 }
 0x30c   : > { %v1292_v50 = vadd.f32 %v1754_v5, %v2443_v59  ;;  %v1371_v52 = vmax.f32 %v1297_v49, 0.0 }
 0x30e   : > { %v1370_v53 = vmax.f32 %v1292_v50, 0.0 }
 0x311   : > { %v1994_v44 = vpop.f32.mrf.mxu0 }
 0x312   : > { %v1307_v45 = vadd.f32 %v1994_v44, %v1754_v5  ;;  %v1393_v44 = vld [vmem:[%s2203_s24 + $0x38] sm:$0xff] }
 0x313   : > { %v1301_v60 = vpop.f32.mrf.mxu0 }
 0x314   : > { %v1302_v48 = vadd.f32 %v1754_v5, %v1301_v60  ;;  %v1373_v40 = vmax.f32 %v1307_v45, 0.0 }
 0x316   : > { %v1372_v51 = vmax.f32 %v1302_v48, 0.0 }
 0x319   : > { %v1997_v61 = vpop.f32.mrf.mxu0 }
 0x31a   : > { %v1317_v35 = vadd.f32 %v1997_v61, %v1754_v5 }
 0x31b   : > { %v1311_v47 = vpop.f32.mrf.mxu0 }
 0x31c   : > { %v1312_v37 = vadd.f32 %v1754_v5, %v1311_v47  ;;  %v1375_v46 = vmax.f32 %v1317_v35, 0.0  ;;  %v1392_v47 = vld [vmem:[%s2203_s24 + $0x30] sm:$0xff] }
 0x31e   : > { %v1374_v39 = vmax.f32 %v1312_v37, 0.0 }
 0x321   : > { %v2000_v62 = vpop.f32.mrf.mxu0 }
 0x322   : > { %v1327_v31 = vadd.f32 %v2000_v62, %v1754_v5 }
 0x323   : > { %v1321_v63 = vpop.f32.mrf.mxu0 }
 0x324   : > { %v1322_v33 = vadd.f32 %v1754_v5, %v1321_v63  ;;  %v1377_v36 = vmax.f32 %v1327_v31, 0.0 }
 0x326   : > { %v1376_v38 = vmax.f32 %v1322_v33, 0.0 }
 0x329   : > { %v2003_v0 = vpop.f32.mrf.mxu0 }
 0x32a   : > { %v1337_v27 = vadd.f32 %v2003_v0, %v1754_v5 }
 0x32b   : > { %v1331_v1 = vpop.f32.mrf.mxu0 }
 0x32c   : > { %v1332_v29 = vadd.f32 %v1754_v5, %v1331_v1  ;;  %v1379_v32 = vmax.f32 %v1337_v27, 0.0  ;;  %v1528_v1 = vld [vmem:[%s2198_s29 + $0x10] sm:$0xff] (%p2210_p6) }
 0x32e   : > { %v1378_v34 = vmax.f32 %v1332_v29, 0.0 }
 0x331   : > { %v2006_v2 = vpop.f32.mrf.mxu0 }
 0x332   : > { %v1347_v20 = vadd.f32 %v2006_v2, %v1754_v5  ;;  %v1526_v2 = vld [vmem:[%s2198_s29] sm:$0xff] (%p2210_p6) }
 0x333   : > { %v1341_v3 = vpop.f32.mrf.mxu0 }
 0x334   : > { %v1342_v24 = vadd.f32 %v1754_v5, %v1341_v3  ;;  %v1381_v28 = vmax.f32 %v1347_v20, 0.0  ;;  %v2098_v3 = vmov (%p2210_p6), 0  }
 0x335   : > { %2071 = vset.pattern.permute.xlu1 (%p2210_p6), %v2098_v3  ;;  %2070 = vset.pattern.permute.xlu0 (%p2210_p6), %v2098_v3 }
 0x336   : > { %v1380_v30 = vmax.f32 %v1342_v24, 0.0  ;;  %1546 = vperm.xlu1 (%p2210_p6), %2071, %v1528_v1   ;;  %1536 = vperm.xlu0 (%p2210_p6), %2070, %v1526_v2  }
 0x339   : > { %v2009_v6 = vpop.f32.mrf.mxu0 }
 0x33a   : > { %v1357_v13 = vadd.f32 %v2009_v6, %v1754_v5  ;;  %v1529_v6 = vld [vmem:[%s2198_s29 + $0x18] sm:$0xff] (%p2210_p6) }
 0x33b   : > { %v1351_v9 = vpop.f32.mrf.mxu0  ;;  %1551 = vperm.xlu1 (%p2210_p6), %2071, %v1529_v6  }
 0x33c   : > { %v1352_v17 = vadd.f32 %v1754_v5, %v1351_v9  ;;  %v1383_v22 = vmax.f32 %v1357_v13, 0.0  ;;  %v1527_v9 = vld [vmem:[%s2198_s29 + $0x8] sm:$0xff] (%p2210_p6) }
 0x33d   : > { %1541 = vperm.xlu0 (%p2210_p6), %2070, %v1527_v9  }
 0x33e   : > { %v1382_v26 = vmax.f32 %v1352_v17, 0.0 }
 0x341   : > { %v2012_v10 = vpop.f32.mrf.mxu0 }
 0x342   : > { %v1367_v11 = vadd.f32 %v2012_v10, %v1754_v5  ;;  %v1530_v10 = vld [vmem:[%s2198_s29 + $0x20] sm:$0xff] (%p2210_p6) }
 0x343   : > { %v1361_v12 = vpop.f32.mrf.mxu0  ;;  %1556 = vperm.xlu0 (%p2210_p6), %2070, %v1530_v10  }
 0x344   : > { %v1385_v15 = vmax.f32 %v1367_v11, 0.0  ;;  %v1362_v16 = vadd.f32 %v1754_v5, %v1361_v12  ;;  %v1531_v5 = vld [vmem:[%s2198_s29 + $0x28] sm:$0xff] (%p2210_p6)  ;;  %v1533_v11 = vld [vmem:[%s2198_s29 + $0x38] sm:$0xff] (%p2210_p6)  ;;  %v1532_v12 = vld [vmem:[%s2198_s29 + $0x30] sm:$0xff] (%p2210_p6) }
 0x345   : > { %1561 = vperm.xlu1 (%p2210_p6), %2071, %v1531_v5  }
 0x346   : > { %v1384_v19 = vmax.f32 %v1362_v16, 0.0  ;;  %2013 = vmatprep.subr.mxu1 %v1385_v15 }
 0x347   : > { %2014 = vmatpush3.msra.mxu1 %v1385_v15  ;;  %1566 = vperm.xlu0 (%p2210_p6), %2070, %v1532_v12  }
 0x348   : > { %2015 = vmatprep.subr.mxu1 %v1384_v19 }
 0x349   : > { %2016 = vmatpush3.msra.mxu1 %v1384_v19  ;;  %1571 = vperm.xlu1 (%p2210_p6), %2071, %v1533_v11  }
 0x34a   : > { %2017 = vmatprep.subr.mxu1 %v1383_v22 }
 0x34b   : > { %2018 = vmatpush3.msra.mxu1 %v1383_v22 }
 0x34c   : > { %2019 = vmatprep.subr.mxu1 %v1382_v26 }
 0x34d   : > { %2020 = vmatpush3.msra.mxu1 %v1382_v26 }
 0x34e   : > { %2021 = vmatprep.subr.mxu1 %v1381_v28 }
 0x34f   : > { %2022 = vmatpush3.msra.mxu1 %v1381_v28 }
 0x350   : > { %2023 = vmatprep.subr.mxu1 %v1380_v30 }
 0x351   : > { %2024 = vmatpush3.msra.mxu1 %v1380_v30 }
 0x352   : > { %2025 = vmatprep.subr.mxu1 %v1379_v32 }
 0x353   : > { %2026 = vmatpush3.msra.mxu1 %v1379_v32 }
 0x354   : > { %2027 = vmatprep.subr.mxu1 %v1378_v34 }
 0x355   : > { %2028 = vmatpush3.msra.mxu1 %v1378_v34 }
 0x356   : > { %2029 = vmatprep.subr.mxu1 %v1377_v36 }
 0x357   : > { %2030 = vmatpush3.msra.mxu1 %v1377_v36 }
 0x358   : > { %2031 = vmatprep.subr.mxu1 %v1376_v38 }
 0x359   : > { %2032 = vmatpush3.msra.mxu1 %v1376_v38 }
 0x35a   : > { %2033 = vmatprep.subr.mxu1 %v1375_v46 }
 0x35b   : > { %2034 = vmatpush3.msra.mxu1 %v1375_v46 }
 0x35c   : > { %2035 = vmatprep.subr.mxu1 %v1374_v39 }
 0x35d   : > { %2036 = vmatpush3.msra.mxu1 %v1374_v39 }
 0x35e   : > { %2037 = vmatprep.subr.mxu1 %v1373_v40 }
 0x35f   : > { %2038 = vmatpush3.msra.mxu1 %v1373_v40 }
 0x360   : > { %2039 = vmatprep.subr.mxu1 %v1372_v51 }
 0x361   : > { %2040 = vmatpush3.msra.mxu1 %v1372_v51 }
 0x362   : > { %2041 = vmatprep.subr.mxu1 %v1371_v52 }
 0x363   : > { %2042 = vmatpush3.msra.mxu1 %v1371_v52 }
 0x364   : > { %2043 = vmatprep.subr.mxu1 %v1370_v53 }
 0x365   : > { %2044 = vmatpush3.msra.mxu1 %v1370_v53 }
 0x366   : > { %2046 = vmatmul.mubr.msk.f32.vlgmr.msra.gmra.mxu1 %vm462_vm2, %v2097_v58 }
 0x367   : > { %2048 = vmatprep.mubr.msk.f32.mxu1 %vm463_vm3, %v2097_v58 }
 0x36a   : > { %2049 = vmatmul.mubr.msk.f32.gmra.mxu1 %vm464_vm4, %v2097_v58 }
 0x36b   : > { %2051 = vmatprep.mubr.msk.f32.mxu1 %vm465_vm5, %v2097_v58 }
 0x36e   : > { %2052 = vmatmul.mubr.msk.f32.gmra.mxu1 %vm466_vm6, %v2097_v58 }
 0x36f   : > { %2054 = vmatprep.mubr.msk.f32.mxu1 %vm467_vm7, %v2097_v58 }
 0x372   : > { %2055 = vmatmul.mubr.msk.f32.gmra.mxu1 %vm468_vm8, %v2097_v58  ;;  %v1390_v58 = vld [vmem:[%s2203_s24 + $0x20] sm:$0xff] }
 0x3b1   : > { %v1547_v16 = vpop.permute.xlu1 (%p2210_p6), %1546  ;;  %v1537_v17 = vpop.permute.xlu0 (%p2210_p6), %1536 }
 0x3b6   : > { %v1552_v26 = vpop.permute.xlu1 (%p2210_p6), %1551 }
 0x3b8   : > { %v1542_v27 = vpop.permute.xlu0 (%p2210_p6), %1541 }
 0x3be   : > { %v1557_v33 = vpop.permute.xlu0 (%p2210_p6), %1556 }
 0x3c0   : > { %v1562_v32 = vpop.permute.xlu1 (%p2210_p6), %1561 }
 0x3c2   : > { %v1567_v45 = vpop.permute.xlu0 (%p2210_p6), %1566 }
 0x3c4   : > { %v1572_v38 = vpop.permute.xlu1 (%p2210_p6), %1571 }
 0x426   : > { %v2047_v8 = vpop.f32.mrf.mxu1 }
 0x427   : > { %v1500_v18 = vadd.f32 %v2047_v8, %v1387_v7 }
 0x428   : > { %v1460_v21 = vpop.f32.mrf.mxu1 }
 0x429   : > { %1508 = vst.msk [vmem:[%s2203_s24 + $0x8] sm:$0xff] %vm1176_vm11, %v1500_v18  ;;  %v1499_v23 = vadd.f32 %v1460_v21, %v1386_v14 }
 0x42a   : > { %v2050_v41 = vpop.f32.mrf.mxu1 }
 0x42b   : > { %1507 = vst.msk [vmem:[%s2203_s24] sm:$0xff] %vm1176_vm11, %v1499_v23  ;;  %v1502_v4 = vadd.f32 %v2050_v41, %v1389_v54 }
 0x42c   : > { %v1470_v25 = vpop.f32.mrf.mxu1 }
 0x42d   : > { %1510 = vst.msk [vmem:[%s2203_s24 + $0x18] sm:$0xff] %vm1176_vm11, %v1502_v4  ;;  %v1501_v56 = vadd.f32 %v1470_v25, %v1388_v55 }
 0x42e   : > { %v2053_v57 = vpop.f32.mrf.mxu1 }
 0x42f   : > { %1509 = vst.msk [vmem:[%s2203_s24 + $0x10] sm:$0xff] %vm1176_vm11, %v1501_v56  ;;  %v1504_v43 = vadd.f32 %v2053_v57, %v1391_v42 }
 0x430   : > { %v1480_v59 = vpop.f32.mrf.mxu1  ;;  %v1519_v24 = vld [vmem:[%s2203_s24 + $0x8] sm:$0xff] (%p2210_p6) }
 0x431   : > { %1512 = vst.msk [vmem:[%s2203_s24 + $0x28] sm:$0xff] %vm1176_vm11, %v1504_v43  ;;  %v1503_v60 = vadd.f32 %v1480_v59, %v1390_v58  ;;  %v1575_v29 = vmul.f32 (%p2210_p6), %v1542_v27, %v1519_v24 }
 0x432   : > { %v2056_v61 = vpop.f32.mrf.mxu1  ;;  %v1518_v15 = vld [vmem:[%s2203_s24] sm:$0xff] (%p2210_p6) }
 0x433   : > { %1511 = vst.msk [vmem:[%s2203_s24 + $0x20] sm:$0xff] %vm1176_vm11, %v1503_v60  ;;  %v1506_v62 = vadd.f32 %v2056_v61, %v1393_v44  ;;  %1517 = sbr.rel (!%p2210_p6) target bundleno = 1090 (0x442), region = 64  ;;  %v1574_v20 = vmul.f32 (%p2210_p6), %v1537_v17, %v1518_v15  ;;  %1583 = vst.msk [vmem:[%s2203_s24 + $0x8] sm:$0xff] (%p2210_p6), %vm1176_vm11, %v1575_v29 }
 0x434   : > { %v1490_v63 = vpop.f32.mrf.mxu1  ;;  %v1521_v22 = vld [vmem:[%s2203_s24 + $0x18] sm:$0xff] (%p2210_p6) }
 0x435   : > { %1514 = vst.msk [vmem:[%s2203_s24 + $0x38] sm:$0xff] %vm1176_vm11, %v1506_v62  ;;  %v1505_v0 = vadd.f32 %v1490_v63, %v1392_v47  ;;  %1582 = vst.msk [vmem:[%s2203_s24] sm:$0xff] (%p2210_p6), %vm1176_vm11, %v1574_v20  ;;  %v1577_v28 = vmul.f32 (%p2210_p6), %v1552_v26, %v1521_v22 }
 0x436   : > { %v1520_v13 = vld [vmem:[%s2203_s24 + $0x10] sm:$0xff] (%p2210_p6) }
 0x437   : > { %1513 = vst.msk [vmem:[%s2203_s24 + $0x30] sm:$0xff] %vm1176_vm11, %v1505_v0  ;;  %v1576_v19 = vmul.f32 (%p2210_p6), %v1547_v16, %v1520_v13  ;;  %1585 = vst.msk [vmem:[%s2203_s24 + $0x18] sm:$0xff] (%p2210_p6), %vm1176_vm11, %v1577_v28 }
 0x438   : > { %v1523_v30 = vld [vmem:[%s2203_s24 + $0x28] sm:$0xff] }
 0x439   : > { %1584 = vst.msk [vmem:[%s2203_s24 + $0x10] sm:$0xff] %vm1176_vm11, %v1576_v19  ;;  %v1579_v34 = vmul.f32 %v1562_v32, %v1523_v30 }
 0x43a   : > { %v1522_v31 = vld [vmem:[%s2203_s24 + $0x20] sm:$0xff] }
 0x43b   : > { %v1578_v35 = vmul.f32 %v1557_v33, %v1522_v31  ;;  %1587 = vst.msk [vmem:[%s2203_s24 + $0x28] sm:$0xff] %vm1176_vm11, %v1579_v34 }
 0x43c   : > { %v1525_v36 = vld [vmem:[%s2203_s24 + $0x38] sm:$0xff] }
 0x43d   : > { %1586 = vst.msk [vmem:[%s2203_s24 + $0x20] sm:$0xff] %vm1176_vm11, %v1578_v35  ;;  %v1581_v46 = vmul.f32 %v1572_v38, %v1525_v36 }
 0x43e   : > { %v1524_v37 = vld [vmem:[%s2203_s24 + $0x30] sm:$0xff] }
 0x43f   : > { %v1580_v48 = vmul.f32 %v1567_v45, %v1524_v37  ;;  %1589 = vst.msk [vmem:[%s2203_s24 + $0x38] sm:$0xff] %vm1176_vm11, %v1581_v46 }
 0x441   : > { %1588 = vst.msk [vmem:[%s2203_s24 + $0x30] sm:$0xff] %vm1176_vm11, %v1580_v48 }
 0x442 PF: > { %s26_s18 = sadd.s32 1, %s2092_s18  }
 0x443   : > { %p23_p7 = scmp.ge.s32.totalorder %s26_s18, 13  }
 0x445   :  { %25 = sbr.rel (!%p23_p7) target bundleno = 16 (0x10), region = 103 }

</bundles_post_ra>
